<compile_context>
chip_gen: v7x
topology: tpu7x:2x2x1
jax: 0.10.0
libtpu: 0.0.40
codegen_flags: <defaults>
</compile_context>

<pallas_src>
import jax
import jax.numpy as jnp
import numpy as np
from jax.experimental import pallas as pl
from jax.experimental.pallas import tpu as pltpu

TAU = 0.25
CHI_LIMIT = 0.29514
LN_EPS = 1e-5  # nn.LayerNorm default


def _layernorm(x, g, b):
    mu = jnp.mean(x, axis=-1, keepdims=True)
    xc = x - mu
    var = jnp.mean(xc * xc, axis=-1, keepdims=True)
    inv = jax.lax.rsqrt(var + LN_EPS)
    return xc * inv * g + b


def conductance_gate_kernel(x_ref, ctx_ref,
                            ng_ref, nb_ref,
                            w1_ref, b1_ref, w2_ref, b2_ref,
                            wc_ref, wp_ref, gbias_ref,
                            out_ref, perm_ref):
    # Cast after the DMA (inputs travel in their native dtype).
    x = x_ref[...].astype(jnp.float32)      # [TM, D]
    ctx = ctx_ref[...].astype(jnp.float32)  # [TM, D]
    tm, d = x.shape

    # self.norm(x)
    x_norm = _layernorm(x, ng_ref[...], nb_ref[...])

    # alignment gate — column form for damping, row (lane-dense) form for permission.
    xc = x * ctx
    raw_col = jnp.sum(xc, axis=-1, keepdims=True)                       # [TM, 1]
    safe_col = jax.nn.sigmoid(raw_col - CHI_LIMIT)                      # [TM, 1]
    ones_row = jnp.ones((1, d), jnp.float32)
    raw_row = jax.lax.dot_general(ones_row, xc, (((1,), (1,)), ((), ())),
                                  preferred_element_type=jnp.float32)   # [1, TM]
    safe_row = jax.nn.sigmoid(raw_row - CHI_LIMIT)                      # [1, TM]

    # TODO(synk): `gate` is undefined in the reference forward(); interpreted as safe_alignment.
    damping = 1.0 - jnp.exp(-TAU * x * safe_col)                        # [TM, D]

    # resonance_proj: Linear -> ResonantPhaseGate(tau) -> Linear  (MXU; optional bf16 operands)
    mdt = w1_ref.dtype
    h = jnp.dot(x_norm.astype(mdt), w1_ref[...],
                preferred_element_type=jnp.float32) + b1_ref[...]
    # TODO(synk): ResonantPhaseGate(mode='tau') is not defined in the source; implemented as x * sigmoid(tau * x).
    h = h * jax.nn.sigmoid(TAU * h)
    r = jnp.dot(h.astype(mdt), w2_ref[...],
                preferred_element_type=jnp.float32) + b2_ref[...]
    resonance = r * damping                                             # [TM, D]

    # Shared LayerNorm statistics for both gates (gamma/beta folded into wc/wp + SMEM biases).
    mu = jnp.mean(resonance, axis=-1, keepdims=True)
    rc = resonance - mu
    var = jnp.mean(rc * rc, axis=-1, keepdims=True)
    res_hat = rc * jax.lax.rsqrt(var + LN_EPS)                          # [TM, D]

    # conductance_gate: (LayerNorm -> Linear(D,1)) as one MXU matvec, then Tanh -> Sigmoid
    c_logit = jnp.dot(res_hat, wc_ref[...],
                      preferred_element_type=jnp.float32) + gbias_ref[0]   # [TM, 1]
    conductance = jax.nn.sigmoid(jnp.tanh(c_logit))
    out_ref[...] = (resonance * jnp.minimum(conductance, CHI_LIMIT)).astype(out_ref.dtype)

    # permission_gate: computed directly in row (lane-dense) form via MXU, scaled by safe_alignment.
    p_logit = jax.lax.dot_general(wp_ref[...], res_hat, (((1,), (1,)), ((), ())),
                                  preferred_element_type=jnp.float32) + gbias_ref[1]  # [1, TM]
    perm_row = jax.nn.sigmoid(p_logit) * safe_row                       # [1, TM]
    perm_ref[...] = perm_row.reshape(perm_ref.shape).astype(perm_ref.dtype)


def _choose_tile(n, target=256):
    """Token tile: multiple of 8, <= target. Caller zero-pads n up to a multiple of it."""
    if n <= target:
        return ((n + 7) // 8) * 8
    for cand in range(target, 7, -8):
        if n % cand == 0:
            return cand
    return target


def conductance_gate(x, context, params, tm=256, matmul_dtype=None):
    B, T, D = x.shape
    N = B * T

    tile = _choose_tile(N, tm)
    Np = ((N + tile - 1) // tile) * tile
    num_tiles = Np // tile

    xf = x.reshape(N, D)              # native dtype; cast happens inside the kernel
    cf = context.reshape(N, D)
    if Np != N:
        pad = Np - N
        xf = jnp.pad(xf, ((0, pad), (0, 0)))
        cf = jnp.pad(cf, ((0, pad), (0, 0)))

    # Fold gate LayerNorm gamma/beta into effective projection weights + scalar biases.
    wc_eff = (params["cg"] * params["cw"]).reshape(D, 1).astype(jnp.float32)
    wp_eff = (params["pg"] * params["pw"]).reshape(1, D).astype(jnp.float32)
    c_bias = jnp.sum(params["cb"] * params["cw"]) + params["cwb"].reshape(())
    p_bias = jnp.sum(params["pb"] * params["pw"]) + params["pwb"].reshape(())
    gate_bias = jnp.stack([c_bias, p_bias]).astype(jnp.float32)          # (2,) -> SMEM

    w1, w2 = params["w1"], params["w2"]
    if matmul_dtype is not None:
        w1 = w1.astype(matmul_dtype)
        w2 = w2.astype(matmul_dtype)

    tok_spec = pl.BlockSpec((tile, D), lambda i: (i, 0))

    def const_spec(shape):
        return pl.BlockSpec(shape, lambda i: (0,) * len(shape))

    in_specs = [
        tok_spec, tok_spec,
        const_spec((1, D)), const_spec((1, D)),        # ng, nb
        const_spec((D, D)), const_spec((1, D)),        # w1, b1
        const_spec((D, D)), const_spec((1, D)),        # w2, b2
        const_spec((D, 1)), const_spec((1, D)),        # wc_eff, wp_eff
        pl.BlockSpec(memory_space=pltpu.MemorySpace.SMEM),  # gate_bias scalars
    ]

    out_specs = (
        pl.BlockSpec((tile, D), lambda i: (i, 0)),
        pl.BlockSpec((1, 1, tile), lambda i: (i, 0, 0)),   # lane-dense permission slab
    )
    out_shape = (
        jax.ShapeDtypeStruct((Np, D), jnp.float32),
        jax.ShapeDtypeStruct((num_tiles, 1, tile), jnp.float32),
    )

    # Conservative VMEM budget (double-buffered token tiles + resident weights), capped for v7x.
    in_item = jnp.dtype(x.dtype).itemsize
    w_item = jnp.dtype(w1.dtype).itemsize
    est = (2 * 2 * tile * D * in_item                       # x, ctx (double-buffered)
           + 2 * tile * D * 4 + 2 * tile * 4                # out, perm (double-buffered)
           + 2 * (2 * D * D * w_item + 8 * D * 4 + 256))    # weights / bias blocks
    vmem_limit = int(min(max(2 * est, 32 * 1024 * 1024), 64 * 1024 * 1024))

    out, perm = pl.pallas_call(
        conductance_gate_kernel,
        grid=(num_tiles,),
        in_specs=in_specs,
        out_specs=out_specs,
        out_shape=out_shape,
        compiler_params=pltpu.CompilerParams(
            dimension_semantics=("parallel",),
            vmem_limit_bytes=vmem_limit),
    )(xf, cf,
      params["ng"], params["nb"],
      w1, params["b1"], w2, params["b2"],
      wc_eff, wp_eff, gate_bias)

    out = out[:N].reshape(B, T, D)
    perm = perm.reshape(Np)[:N].reshape(B, T, 1)
    return out, perm


def reference(x, context, params):
    # Pure-JAX reference with identical semantics (unfused) for validation.
    xf = x.astype(jnp.float32)
    x_norm = _layernorm(xf, params["ng"], params["nb"])
    raw_align = jnp.sum(xf * context, axis=-1, keepdims=True)
    safe_align = jax.nn.sigmoid(raw_align - CHI_LIMIT)
    damping = 1.0 - jnp.exp(-TAU * xf * safe_align)
    h = x_norm @ params["w1"] + params["b1"]
    h = h * jax.nn.sigmoid(TAU * h)
    r = h @ params["w2"] + params["b2"]
    resonance = r * damping
    rn_c = _layernorm(resonance, params["cg"], params["cb"])
    conductance = jax.nn.sigmoid(jnp.tanh(
        jnp.sum(rn_c * params["cw"], axis=-1, keepdims=True) + params["cwb"]))
    output = resonance * jnp.minimum(conductance, CHI_LIMIT)
    rn_p = _layernorm(resonance, params["pg"], params["pb"])
    permission = jax.nn.sigmoid(
        jnp.sum(rn_p * params["pw"], axis=-1, keepdims=True) + params["pwb"]) * safe_align
    return output, permission


def init_params(key, D):
    ks = jax.random.split(key, 8)
    s = 1.0 / np.sqrt(D)
    return {
        # self.norm
        "ng": jnp.ones((1, D), jnp.float32),
        "nb": jnp.zeros((1, D), jnp.float32),
        # resonance_proj (Linear weights stored as [in, out])
        "w1": jax.random.uniform(ks[0], (D, D), jnp.float32, -s, s),
        "b1": jax.random.uniform(ks[1], (1, D), jnp.float32, -s, s),
        "w2": jax.random.uniform(ks[2], (D, D), jnp.float32, -s, s),
        "b2": jax.random.uniform(ks[3], (1, D), jnp.float32, -s, s),
        # conductance_gate: LayerNorm + Linear(D, 1)
        "cg": jnp.ones((1, D), jnp.float32),
        "cb": jnp.zeros((1, D), jnp.float32),
        "cw": jax.random.uniform(ks[4], (1, D), jnp.float32, -s, s),
        "cwb": jax.random.uniform(ks[5], (1, 1), jnp.float32, -s, s),
        # permission_gate: LayerNorm + Linear(D, 1)
        "pg": jnp.ones((1, D), jnp.float32),
        "pb": jnp.zeros((1, D), jnp.float32),
        "pw": jax.random.uniform(ks[6], (1, D), jnp.float32, -s, s),
        "pwb": jax.random.uniform(ks[7], (1, 1), jnp.float32, -s, s),
    }


if __name__ == "__main__":
    B, T, D = 2, 8, 32
    key = jax.random.PRNGKey(0)
    kx, kc, kp = jax.random.split(key, 3)
    x = jax.random.normal(kx, (B, T, D), jnp.float32)
    context = jax.random.normal(kc, (B, T, D), jnp.float32)
    params = init_params(kp, D)

    out, perm = conductance_gate(x, context, params)
    out = jax.block_until_ready(out)
    perm = jax.block_until_ready(perm)

    ref_out, ref_perm = reference(x, context, params)
    assert out.shape == (B, T, D) and perm.shape == (B, T, 1)
    np.testing.assert_allclose(np.asarray(out), np.asarray(ref_out), atol=1e-4, rtol=1e-4)
    np.testing.assert_allclose(np.asarray(perm), np.asarray(ref_perm), atol=1e-4, rtol=1e-4)
    print("KERNEL_OK")
</pallas_src>

<mosaic_0001>
module attributes {stable_mosaic.version = 11 : i64} {
  func.func @conductance_gate_kernel(%arg0: i32, %arg1: memref<16x32xf32, #tpu.memory_space<vmem>>, %arg2: memref<16x32xf32, #tpu.memory_space<vmem>>, %arg3: memref<1x32xf32, #tpu.memory_space<vmem>>, %arg4: memref<1x32xf32, #tpu.memory_space<vmem>>, %arg5: memref<32x32xf32, #tpu.memory_space<vmem>>, %arg6: memref<1x32xf32, #tpu.memory_space<vmem>>, %arg7: memref<32x32xf32, #tpu.memory_space<vmem>>, %arg8: memref<1x32xf32, #tpu.memory_space<vmem>>, %arg9: memref<32x1xf32, #tpu.memory_space<vmem>>, %arg10: memref<1x32xf32, #tpu.memory_space<vmem>>, %arg11: memref<2xf32, #tpu.memory_space<smem>>, %arg12: memref<16x32xf32, #tpu.memory_space<vmem>>, %arg13: memref<1x1x16xf32, #tpu.memory_space<vmem>>) attributes {dimension_semantics = [#tpu.dimension_semantics<parallel>], iteration_bounds = array<i64: 1>, scalar_prefetch = 0 : i64, scratch_operands = 0 : i64, tpu.core_type = #tpu.core_type<tc>, window_params = [{transform_indices = @transform_0, window_bounds = array<i64: 16, 32>}, {transform_indices = @transform_1, window_bounds = array<i64: 16, 32>}, {pipeline_mode = #tpu.pipeline_mode<synchronous>, transform_indices = @transform_2, window_bounds = array<i64: 1, 32>}, {pipeline_mode = #tpu.pipeline_mode<synchronous>, transform_indices = @transform_3, window_bounds = array<i64: 1, 32>}, {pipeline_mode = #tpu.pipeline_mode<synchronous>, transform_indices = @transform_4, window_bounds = array<i64: 32, 32>}, {pipeline_mode = #tpu.pipeline_mode<synchronous>, transform_indices = @transform_5, window_bounds = array<i64: 1, 32>}, {pipeline_mode = #tpu.pipeline_mode<synchronous>, transform_indices = @transform_6, window_bounds = array<i64: 32, 32>}, {pipeline_mode = #tpu.pipeline_mode<synchronous>, transform_indices = @transform_7, window_bounds = array<i64: 1, 32>}, {pipeline_mode = #tpu.pipeline_mode<synchronous>, transform_indices = @transform_8, window_bounds = array<i64: 32, 1>}, {pipeline_mode = #tpu.pipeline_mode<synchronous>, transform_indices = @transform_9, window_bounds = array<i64: 1, 32>}, {transform_indices = @transform_10, window_bounds = array<i64: 2>}, {transform_indices = @transform_11, window_bounds = array<i64: 16, 32>}, {transform_indices = @transform_12, window_bounds = array<i64: 1, 1, 16>}]} {
    %c0 = arith.constant 0 : index
    %c0_0 = arith.constant 0 : index
    %0 = vector.load %arg1[%c0, %c0_0] : memref<16x32xf32, #tpu.memory_space<vmem>>, vector<16x32xf32>
    %c0_1 = arith.constant 0 : index
    %c0_2 = arith.constant 0 : index
    %1 = vector.load %arg2[%c0_1, %c0_2] : memref<16x32xf32, #tpu.memory_space<vmem>>, vector<16x32xf32>
    %c0_3 = arith.constant 0 : index
    %c0_4 = arith.constant 0 : index
    %2 = vector.load %arg3[%c0_3, %c0_4] : memref<1x32xf32, #tpu.memory_space<vmem>>, vector<1x32xf32>
    %c0_5 = arith.constant 0 : index
    %c0_6 = arith.constant 0 : index
    %3 = vector.load %arg4[%c0_5, %c0_6] : memref<1x32xf32, #tpu.memory_space<vmem>>, vector<1x32xf32>
    %cst = arith.constant dense<0.000000e+00> : vector<16xf32>
    %4 = vector.multi_reduction <add>, %0, %cst [1] : vector<16x32xf32> to vector<16xf32>
    %5 = vector.shape_cast %4 : vector<16xf32> to vector<16x1xf32>
    %cst_7 = arith.constant 3.200000e+01 : f32
    %6 = vector.broadcast %cst_7 : f32 to vector<16x1xf32>
    %7 = arith.divf %5, %6 : vector<16x1xf32>
    %8 = vector.broadcast %7 : vector<16x1xf32> to vector<16x32xf32>
    %9 = arith.subf %0, %8 : vector<16x32xf32>
    %10 = arith.mulf %9, %9 : vector<16x32xf32>
    %cst_8 = arith.constant dense<0.000000e+00> : vector<16xf32>
    %11 = vector.multi_reduction <add>, %10, %cst_8 [1] : vector<16x32xf32> to vector<16xf32>
    %12 = vector.shape_cast %11 : vector<16xf32> to vector<16x1xf32>
    %cst_9 = arith.constant 3.200000e+01 : f32
    %13 = vector.broadcast %cst_9 : f32 to vector<16x1xf32>
    %14 = arith.divf %12, %13 : vector<16x1xf32>
    %cst_10 = arith.constant 9.99999974E-6 : f32
    %15 = vector.broadcast %cst_10 : f32 to vector<16x1xf32>
    %16 = arith.addf %14, %15 : vector<16x1xf32>
    %17 = math.rsqrt %16 : vector<16x1xf32>
    %18 = vector.broadcast %17 : vector<16x1xf32> to vector<16x32xf32>
    %19 = arith.mulf %9, %18 : vector<16x32xf32>
    %20 = vector.broadcast %2 : vector<1x32xf32> to vector<16x32xf32>
    %21 = arith.mulf %19, %20 : vector<16x32xf32>
    %22 = vector.broadcast %3 : vector<1x32xf32> to vector<16x32xf32>
    %23 = arith.addf %21, %22 : vector<16x32xf32>
    %24 = arith.mulf %0, %1 : vector<16x32xf32>
    %cst_11 = arith.constant dense<0.000000e+00> : vector<16xf32>
    %25 = vector.multi_reduction <add>, %24, %cst_11 [1] : vector<16x32xf32> to vector<16xf32>
    %26 = vector.shape_cast %25 : vector<16xf32> to vector<16x1xf32>
    %cst_12 = arith.constant 2.951400e-01 : f32
    %27 = vector.broadcast %cst_12 : f32 to vector<16x1xf32>
    %28 = arith.subf %26, %27 : vector<16x1xf32>
    %29 = arith.negf %28 : vector<16x1xf32>
    %30 = math.exp %29 : vector<16x1xf32>
    %cst_13 = arith.constant 1.000000e+00 : f32
    %31 = vector.broadcast %cst_13 : f32 to vector<16x1xf32>
    %32 = arith.addf %31, %30 : vector<16x1xf32>
    %33 = arith.divf %31, %32 : vector<16x1xf32>
    %cst_14 = arith.constant 1.000000e+00 : f32
    %34 = vector.broadcast %cst_14 : f32 to vector<1x32xf32>
    %cst_15 = arith.constant dense<0.000000e+00> : vector<1x16xf32>
    %35 = tpu.matmul %34, %24, %cst_15 {dimension_numbers = #tpu.dot_dimension_numbers<[1], [1], [0], [0], [0, 0, 1, 0], [], []>} : vector<1x32xf32>, vector<16x32xf32>, vector<1x16xf32> -> vector<1x16xf32>
    %cst_16 = arith.constant 2.951400e-01 : f32
    %36 = vector.broadcast %cst_16 : f32 to vector<1x16xf32>
    %37 = arith.subf %35, %36 : vector<1x16xf32>
    %38 = arith.negf %37 : vector<1x16xf32>
    %39 = math.exp %38 : vector<1x16xf32>
    %cst_17 = arith.constant 1.000000e+00 : f32
    %40 = vector.broadcast %cst_17 : f32 to vector<1x16xf32>
    %41 = arith.addf %40, %39 : vector<1x16xf32>
    %42 = arith.divf %40, %41 : vector<1x16xf32>
    %cst_18 = arith.constant -2.500000e-01 : f32
    %43 = vector.broadcast %cst_18 : f32 to vector<16x32xf32>
    %44 = arith.mulf %43, %0 : vector<16x32xf32>
    %45 = vector.broadcast %33 : vector<16x1xf32> to vector<16x32xf32>
    %46 = arith.mulf %44, %45 : vector<16x32xf32>
    %47 = math.exp %46 : vector<16x32xf32>
    %cst_19 = arith.constant 1.000000e+00 : f32
    %48 = vector.broadcast %cst_19 : f32 to vector<16x32xf32>
    %49 = arith.subf %48, %47 : vector<16x32xf32>
    %c0_20 = arith.constant 0 : index
    %c0_21 = arith.constant 0 : index
    %50 = vector.load %arg5[%c0_20, %c0_21] : memref<32x32xf32, #tpu.memory_space<vmem>>, vector<32x32xf32>
    %cst_22 = arith.constant dense<0.000000e+00> : vector<16x32xf32>
    %51 = tpu.matmul %23, %50, %cst_22 {dimension_numbers = #tpu.dot_dimension_numbers<[1], [0], [0], [1], [0, 0, 1, 1], [], []>} : vector<16x32xf32>, vector<32x32xf32>, vector<16x32xf32> -> vector<16x32xf32>
    %c0_23 = arith.constant 0 : index
    %c0_24 = arith.constant 0 : index
    %52 = vector.load %arg6[%c0_23, %c0_24] : memref<1x32xf32, #tpu.memory_space<vmem>>, vector<1x32xf32>
    %53 = vector.broadcast %52 : vector<1x32xf32> to vector<16x32xf32>
    %54 = arith.addf %51, %53 : vector<16x32xf32>
    %cst_25 = arith.constant 2.500000e-01 : f32
    %55 = vector.broadcast %cst_25 : f32 to vector<16x32xf32>
    %56 = arith.mulf %55, %54 : vector<16x32xf32>
    %57 = arith.negf %56 : vector<16x32xf32>
    %58 = math.exp %57 : vector<16x32xf32>
    %cst_26 = arith.constant 1.000000e+00 : f32
    %59 = vector.broadcast %cst_26 : f32 to vector<16x32xf32>
    %60 = arith.addf %59, %58 : vector<16x32xf32>
    %61 = arith.divf %59, %60 : vector<16x32xf32>
    %62 = arith.mulf %54, %61 : vector<16x32xf32>
    %c0_27 = arith.constant 0 : index
    %c0_28 = arith.constant 0 : index
    %63 = vector.load %arg7[%c0_27, %c0_28] : memref<32x32xf32, #tpu.memory_space<vmem>>, vector<32x32xf32>
    %cst_29 = arith.constant dense<0.000000e+00> : vector<16x32xf32>
    %64 = tpu.matmul %62, %63, %cst_29 {dimension_numbers = #tpu.dot_dimension_numbers<[1], [0], [0], [1], [0, 0, 1, 1], [], []>} : vector<16x32xf32>, vector<32x32xf32>, vector<16x32xf32> -> vector<16x32xf32>
    %c0_30 = arith.constant 0 : index
    %c0_31 = arith.constant 0 : index
    %65 = vector.load %arg8[%c0_30, %c0_31] : memref<1x32xf32, #tpu.memory_space<vmem>>, vector<1x32xf32>
    %66 = vector.broadcast %65 : vector<1x32xf32> to vector<16x32xf32>
    %67 = arith.addf %64, %66 : vector<16x32xf32>
    %68 = arith.mulf %67, %49 : vector<16x32xf32>
    %cst_32 = arith.constant dense<0.000000e+00> : vector<16xf32>
    %69 = vector.multi_reduction <add>, %68, %cst_32 [1] : vector<16x32xf32> to vector<16xf32>
    %70 = vector.shape_cast %69 : vector<16xf32> to vector<16x1xf32>
    %cst_33 = arith.constant 3.200000e+01 : f32
    %71 = vector.broadcast %cst_33 : f32 to vector<16x1xf32>
    %72 = arith.divf %70, %71 : vector<16x1xf32>
    %73 = vector.broadcast %72 : vector<16x1xf32> to vector<16x32xf32>
    %74 = arith.subf %68, %73 : vector<16x32xf32>
    %75 = arith.mulf %74, %74 : vector<16x32xf32>
    %cst_34 = arith.constant dense<0.000000e+00> : vector<16xf32>
    %76 = vector.multi_reduction <add>, %75, %cst_34 [1] : vector<16x32xf32> to vector<16xf32>
    %77 = vector.shape_cast %76 : vector<16xf32> to vector<16x1xf32>
    %cst_35 = arith.constant 3.200000e+01 : f32
    %78 = vector.broadcast %cst_35 : f32 to vector<16x1xf32>
    %79 = arith.divf %77, %78 : vector<16x1xf32>
    %cst_36 = arith.constant 9.99999974E-6 : f32
    %80 = vector.broadcast %cst_36 : f32 to vector<16x1xf32>
    %81 = arith.addf %79, %80 : vector<16x1xf32>
    %82 = math.rsqrt %81 : vector<16x1xf32>
    %83 = vector.broadcast %82 : vector<16x1xf32> to vector<16x32xf32>
    %84 = arith.mulf %74, %83 : vector<16x32xf32>
    %c0_37 = arith.constant 0 : index
    %c0_38 = arith.constant 0 : index
    %85 = vector.load %arg9[%c0_37, %c0_38] : memref<32x1xf32, #tpu.memory_space<vmem>>, vector<32x1xf32>
    %cst_39 = arith.constant dense<0.000000e+00> : vector<16x1xf32>
    %86 = tpu.matmul %84, %85, %cst_39 {dimension_numbers = #tpu.dot_dimension_numbers<[1], [0], [0], [1], [0, 0, 1, 1], [], []>} : vector<16x32xf32>, vector<32x1xf32>, vector<16x1xf32> -> vector<16x1xf32>
    %c0_40 = arith.constant 0 : index
    %87 = memref.load %arg11[%c0_40] : memref<2xf32, #tpu.memory_space<smem>>
    %88 = vector.broadcast %87 : f32 to vector<16x1xf32>
    %89 = arith.addf %86, %88 : vector<16x1xf32>
    %90 = math.tanh %89 : vector<16x1xf32>
    %91 = arith.negf %90 : vector<16x1xf32>
    %92 = math.exp %91 : vector<16x1xf32>
    %cst_41 = arith.constant 1.000000e+00 : f32
    %93 = vector.broadcast %cst_41 : f32 to vector<16x1xf32>
    %94 = arith.addf %93, %92 : vector<16x1xf32>
    %95 = arith.divf %93, %94 : vector<16x1xf32>
    %cst_42 = arith.constant 2.951400e-01 : f32
    %96 = vector.broadcast %cst_42 : f32 to vector<16x1xf32>
    %97 = arith.minimumf %95, %96 : vector<16x1xf32>
    %98 = vector.broadcast %97 : vector<16x1xf32> to vector<16x32xf32>
    %99 = arith.mulf %68, %98 : vector<16x32xf32>
    %c0_43 = arith.constant 0 : index
    %c0_44 = arith.constant 0 : index
    %100 = vector.load %arg12[%c0_43, %c0_44] : memref<16x32xf32, #tpu.memory_space<vmem>>, vector<16x32xf32>
    tpu.vector_store %arg12[%c0_43, %c0_44], %99 {strides = array<i32>} : memref<16x32xf32, #tpu.memory_space<vmem>>, vector<16x32xf32>,
    %c0_45 = arith.constant 0 : index
    %c0_46 = arith.constant 0 : index
    %101 = vector.load %arg10[%c0_45, %c0_46] : memref<1x32xf32, #tpu.memory_space<vmem>>, vector<1x32xf32>
    %cst_47 = arith.constant dense<0.000000e+00> : vector<1x16xf32>
    %102 = tpu.matmul %101, %84, %cst_47 {dimension_numbers = #tpu.dot_dimension_numbers<[1], [1], [0], [0], [0, 0, 1, 0], [], []>} : vector<1x32xf32>, vector<16x32xf32>, vector<1x16xf32> -> vector<1x16xf32>
    %c1 = arith.constant 1 : index
    %103 = memref.load %arg11[%c1] : memref<2xf32, #tpu.memory_space<smem>>
    %104 = vector.broadcast %103 : f32 to vector<1x16xf32>
    %105 = arith.addf %102, %104 : vector<1x16xf32>
    %106 = arith.negf %105 : vector<1x16xf32>
    %107 = math.exp %106 : vector<1x16xf32>
    %cst_48 = arith.constant 1.000000e+00 : f32
    %108 = vector.broadcast %cst_48 : f32 to vector<1x16xf32>
    %109 = arith.addf %108, %107 : vector<1x16xf32>
    %110 = arith.divf %108, %109 : vector<1x16xf32>
    %111 = arith.mulf %110, %42 : vector<1x16xf32>
    %112 = vector.shape_cast %111 : vector<1x16xf32> to vector<1x1x16xf32>
    %c0_49 = arith.constant 0 : index
    %c0_50 = arith.constant 0 : index
    %c0_51 = arith.constant 0 : index
    %113 = vector.load %arg13[%c0_49, %c0_50, %c0_51] : memref<1x1x16xf32, #tpu.memory_space<vmem>>, vector<1x1x16xf32>
    tpu.vector_store %arg13[%c0_49, %c0_50, %c0_51], %112 {strides = array<i32>} : memref<1x1x16xf32, #tpu.memory_space<vmem>>, vector<1x1x16xf32>,
    return
  }
  func.func @transform_0(%arg0: i32) -> (i32, i32) {
    %c0_i32 = arith.constant 0 : i32
    %c0_i32_0 = arith.constant 0 : i32
    return %arg0, %c0_i32 : i32, i32
  }
  func.func @transform_1(%arg0: i32) -> (i32, i32) {
    %c0_i32 = arith.constant 0 : i32
    %c0_i32_0 = arith.constant 0 : i32
    return %arg0, %c0_i32 : i32, i32
  }
  func.func @transform_2(%arg0: i32) -> (i32, i32) {
    %c0_i32 = arith.constant 0 : i32
    %c0_i32_0 = arith.constant 0 : i32
    %c0_i32_1 = arith.constant 0 : i32
    return %c0_i32, %c0_i32_0 : i32, i32
  }
  func.func @transform_3(%arg0: i32) -> (i32, i32) {
    %c0_i32 = arith.constant 0 : i32
    %c0_i32_0 = arith.constant 0 : i32
    %c0_i32_1 = arith.constant 0 : i32
    return %c0_i32, %c0_i32_0 : i32, i32
  }
  func.func @transform_4(%arg0: i32) -> (i32, i32) {
    %c0_i32 = arith.constant 0 : i32
    %c0_i32_0 = arith.constant 0 : i32
    %c0_i32_1 = arith.constant 0 : i32
    return %c0_i32, %c0_i32_0 : i32, i32
  }
  func.func @transform_5(%arg0: i32) -> (i32, i32) {
    %c0_i32 = arith.constant 0 : i32
    %c0_i32_0 = arith.constant 0 : i32
    %c0_i32_1 = arith.constant 0 : i32
    return %c0_i32, %c0_i32_0 : i32, i32
  }
  func.func @transform_6(%arg0: i32) -> (i32, i32) {
    %c0_i32 = arith.constant 0 : i32
    %c0_i32_0 = arith.constant 0 : i32
    %c0_i32_1 = arith.constant 0 : i32
    return %c0_i32, %c0_i32_0 : i32, i32
  }
  func.func @transform_7(%arg0: i32) -> (i32, i32) {
    %c0_i32 = arith.constant 0 : i32
    %c0_i32_0 = arith.constant 0 : i32
    %c0_i32_1 = arith.constant 0 : i32
    return %c0_i32, %c0_i32_0 : i32, i32
  }
  func.func @transform_8(%arg0: i32) -> (i32, i32) {
    %c0_i32 = arith.constant 0 : i32
    %c0_i32_0 = arith.constant 0 : i32
    %c0_i32_1 = arith.constant 0 : i32
    return %c0_i32, %c0_i32_0 : i32, i32
  }
  func.func @transform_9(%arg0: i32) -> (i32, i32) {
    %c0_i32 = arith.constant 0 : i32
    %c0_i32_0 = arith.constant 0 : i32
    %c0_i32_1 = arith.constant 0 : i32
    return %c0_i32, %c0_i32_0 : i32, i32
  }
  func.func @transform_10(%arg0: i32) -> i32 {
    %c0_i32 = arith.constant 0 : i32
    %c0_i32_0 = arith.constant 0 : i32
    return %c0_i32 : i32
  }
  func.func @transform_11(%arg0: i32) -> (i32, i32) {
    %c0_i32 = arith.constant 0 : i32
    %c0_i32_0 = arith.constant 0 : i32
    return %arg0, %c0_i32 : i32, i32
  }
  func.func @transform_12(%arg0: i32) -> (i32, i32, i32) {
    %c0_i32 = arith.constant 0 : i32
    %c0_i32_0 = arith.constant 0 : i32
    %c0_i32_1 = arith.constant 0 : i32
    return %arg0, %c0_i32, %c0_i32_0 : i32, i32, i32
  }
}

</mosaic_0001>

<bundles_post_ra>
// kernel: tpu_custom_call.1
= control target key start
LH: loop header
LB: loop body
LE: loop exit
PB: predicated region body
PF: predicated region fallthrough
CT: control target
= control target key end

     0   :  { %18 = vsyncpa [#allocation3], 0  ;;  %s1362_s0 = inlined_call_operand.vmem [shape: f32[16,32], index: 0, kind: input, shape index: {}]   ;;  %s1363_s1 = inlined_call_operand.hbm [shape: f32[16,32], index: 1, kind: input, shape index: {}]   ;;  %s1364_s2 = inlined_call_operand.hbm [shape: f32[1,32], index: 2, kind: input, shape index: {}]   ;;  %s1365_s3 = inlined_call_operand.hbm [shape: f32[1,32], index: 3, kind: input, shape index: {}]   ;;  %s1366_s4 = inlined_call_operand.vmem [shape: f32[32,32], index: 4, kind: input, shape index: {}]   ;;  %s1367_s5 = inlined_call_operand.vmem [shape: f32[1,32], index: 5, kind: input, shape index: {}]   ;;  %s1368_s6 = inlined_call_operand.hbm [shape: f32[32,32], index: 6, kind: input, shape index: {}]   ;;  %s1369_s7 = inlined_call_operand.vmem [shape: f32[1,32], index: 7, kind: input, shape index: {}]   ;;  %s1370_s8 = inlined_call_operand.vmem [shape: f32[32,1], index: 8, kind: input, shape index: {}]   ;;  %s1371_s9 = inlined_call_operand.vmem [shape: f32[1,32], index: 9, kind: input, shape index: {}]   ;;  %s1372_s10 = inlined_call_operand.vmem [shape: f32[2], index: 10, kind: input, shape index: {}]   ;;  %s1373_s11 = inlined_call_operand.hbm [shape: f32[16,32], index: 11, kind: output, shape index: {0}]   ;;  %s1374_s12 = inlined_call_operand.hbm [shape: f32[1,1,16], index: 12, kind: output, shape index: {1}]  }
   0x1   :  { %19 = vsyncpa [#allocation7], 0 }
   0x2   :  { %20 = vsyncpa [#allocation10], 0 }
   0x3   :  { %21 = vsyncpa [#allocation5], 0 }
   0x4   :  { %22 = vsyncpa [#allocation4], 0 }
   0x5   :  { %23 = vsyncpa [#allocation14], 0  ;;  %s1089_s21 = smov [#allocation6]   ;;  %s1090_s23 = smov [#allocation2]  }
   0x6   :  { %s44_s22 = sshll.u32 %s1089_s21, 4  ;;  %s31_s24 = sshll.u32 %s1090_s23, 4  ;;  %s45_s22 = int_to_ptr.vmem [resolvable:$true] %s44_s22  ;;  %s1168_s24 = int_to_ptr.vmem [resolvable:$true] %s31_s24 }
   0x7   :  { %s933_s27 = scalar_lea.hbm %s1364_s2, 16 }
   0x8   :  { %p934_p0 = scmp.ne.s32.totalorder %s1364_s2, %s933_s27  ;;  %p937_p1 = scmp.lt.u32.totalorder %s933_s27, %s1364_s2 }
   0xa   :  { %p939_p2 = pnand %p937_p1, %p934_p0 }
   0xc   :  { %942 = shalt.err (!%p939_p2)
}
   0xd   :  { %s943_s14 = scalar_lea.vmem %s45_s22, 16  ;;  %s947_s15 = scalar_lea.vmem %s45_s22, 32 }
   0xe   :  { %p944_p3 = scmp.ne.s32.totalorder %s45_s22, %s943_s14  ;;  %p948_p4 = scmp.lt.s32.totalorder %s45_s22, %s45_s22 }
   0xf   :  { %p949_p5 = scmp.lt.s32.totalorder %s947_s15, %s943_s14 }
  0x11   :  { %p950_p6 = por %p949_p5, %p948_p4 }
  0x13   :  { %p951_p7 = pnand %p950_p6, %p944_p3 }
  0x15   :  { %954 = shalt.err (!%p951_p7)
}
  0x16   :  { %47 = dma.hbm_to_vmem [thread:$0]  %s1364_s2, 16, %s45_s22, [#allocation7]  }
  0x17   :  { %s955_s20 = scalar_lea.hbm %s1363_s1, 256 }
  0x18   :  { %p956_p8 = scmp.ne.s32.totalorder %s1363_s1, %s955_s20  ;;  %p959_p9 = scmp.lt.u32.totalorder %s955_s20, %s1363_s1 }
  0x1a   :  { %p961_p10 = pnand %p959_p9, %p956_p8 }
  0x1c   :  { %964 = shalt.err (!%p961_p10)
}
  0x1d   :  { %s965_s27 = scalar_lea.vmem %s1168_s24, 256  ;;  %p970_p12 = scmp.lt.s32.totalorder %s1168_s24, %s1168_s24 }
  0x1e   :  { %p966_p11 = scmp.ne.s32.totalorder %s1168_s24, %s965_s27  ;;  %p971_p13 = scmp.lt.s32.totalorder %s965_s27, %s965_s27 }
  0x20   :  { %p972_p0 = por %p971_p13, %p970_p12 }
  0x22   :  { %p973_p1 = pnand %p972_p0, %p966_p11 }
  0x24   :  { %976 = shalt.err (!%p973_p1)
}
  0x25   :  { %s1091_s2 = smov 128   ;;  %s1092_s22 = smov 8  }
  0x26   :  { %37 = dma.hbm_to_vmem [thread:$0]  %s1363_s1, 256, %s1168_s24, [#allocation3], %s1091_s2, %s1091_s2, %s1092_s22  }
  0x27   :  { %s1093_s30 = smov [#allocation8]   ;;  %s1094_s14 = smov [#allocation9]  }
  0x28   :  { %s54_s13 = sshll.u32 %s1093_s30, 4  ;;  %s67_s15 = sshll.u32 %s1094_s14, 4  ;;  %s55_s13 = int_to_ptr.vmem [resolvable:$true] %s54_s13  ;;  %s1202_s15 = int_to_ptr.vmem [resolvable:$true] %s67_s15 }
  0x29   :  { %s977_s18 = scalar_lea.hbm %s1365_s3, 16 }
  0x2a   :  { %p978_p2 = scmp.ne.s32.totalorder %s1365_s3, %s977_s18  ;;  %p981_p3 = scmp.lt.u32.totalorder %s977_s18, %s1365_s3 }
  0x2c   :  { %p983_p4 = pnand %p981_p3, %p978_p2 }
  0x2e   :  { %986 = shalt.err (!%p983_p4)
}
  0x2f   :  { %s987_s1 = scalar_lea.vmem %s55_s13, 16  ;;  %s991_s24 = scalar_lea.vmem %s55_s13, 32 }
  0x30   :  { %p988_p5 = scmp.ne.s32.totalorder %s55_s13, %s987_s1  ;;  %p992_p6 = scmp.lt.s32.totalorder %s55_s13, %s55_s13 }
  0x31   :  { %p993_p7 = scmp.lt.s32.totalorder %s991_s24, %s987_s1 }
  0x33   :  { %p994_p8 = por %p993_p7, %p992_p6 }
  0x35   :  { %p995_p9 = pnand %p994_p8, %p988_p5 }
  0x37   :  { %998 = shalt.err (!%p995_p9)
}
  0x38   :  { %57 = dma.hbm_to_vmem [thread:$0]  %s1365_s3, 16, %s55_s13, [#allocation7]  }
  0x39   :  { %s999_s29 = scalar_lea.hbm %s1368_s6, 512 }
  0x3a   :  { %p1000_p10 = scmp.ne.s32.totalorder %s1368_s6, %s999_s29  ;;  %p1003_p11 = scmp.lt.u32.totalorder %s999_s29, %s1368_s6 }
  0x3c   :  { %p1005_p12 = pnand %p1003_p11, %p1000_p10 }
  0x3e   :  { %1008 = shalt.err (!%p1005_p12)
}
  0x3f   :  { %s1009_s18 = scalar_lea.vmem %s1202_s15, 512  ;;  %p1014_p0 = scmp.lt.s32.totalorder %s1202_s15, %s1202_s15 }
  0x40   :  { %p1010_p13 = scmp.ne.s32.totalorder %s1202_s15, %s1009_s18  ;;  %p1015_p1 = scmp.lt.s32.totalorder %s1009_s18, %s1009_s18 }
  0x42   :  { %p1016_p2 = por %p1015_p1, %p1014_p0 }
  0x44   :  { %p1017_p3 = pnand %p1016_p2, %p1010_p13 }
  0x46   :  { %1020 = shalt.err (!%p1017_p3)
}
  0x47   :  { %73 = dma.hbm_to_vmem [thread:$0]  %s1368_s6, 512, %s1202_s15, [#allocation10], %s1091_s2, %s1091_s2, %s1092_s22  }
  0x48   :  { %s86_s21 = sshll.u32 %s1372_s10, 4  ;;  %s87_s21 = int_to_ptr.vmem [resolvable:$true] %s86_s21 }
  0x49   :  { %s1021_s23 = scalar_lea.vmem %s87_s21, 16  ;;  %p1026_p5 = scmp.lt.s32.totalorder %s87_s21, %s87_s21 }
  0x4a   :  { %p1022_p4 = scmp.ne.s32.totalorder %s87_s21, %s1021_s23  ;;  %p1027_p6 = scmp.lt.s32.totalorder %s1021_s23, %s1021_s23 }
  0x4c   :  { %p1028_p7 = por %p1027_p6, %p1026_p5 }
  0x4e   :  { %p1029_p8 = pnand %p1028_p7, %p1022_p4 }
  0x50   :  { %1032 = shalt.err (!%p1029_p8)
}
  0x51   :  { %s1095_s1 = smov [#allocation11]  }
  0x52   :  { %89 = dma.vmem_to_smem %s87_s21, 16, %s1095_s1, [#allocation5]  }
  0x53   :  { %1077 = dma.done.wait [#allocation3], 256  }
  0x54   :  { %1078 = vsyncadd [#allocation3], 4294967040 }
  0x55   :  { %1079 = dma.done.wait [#allocation7], 32  }
  0x56   :  { %1080 = vsyncadd [#allocation7], 4294967264 }
  0x57   :  { %1081 = dma.done.wait [#allocation10], 512  }
  0x58   :  { %1082 = vsyncadd [#allocation10], 4294966784 }
  0x59   :  { %1083 = dma.done.wait [#allocation5], 16  }
  0x5a   :  { %1084 = vsyncadd [#allocation5], 4294967280 }
  0x5b   :  { %105 = sfence }
  0x5c   :  { %v1242_v0 = vld [vmem:[%s1362_s0] sm:$0xff]  ;;  %vm112_vm0 = vcmask 261120   ;;  %v1247_v1 = vld [vmem:[%s1362_s0 + $0x8] sm:$0xff]  ;;  %v276_v16 = vld [vmem:[%s1366_s4 + $0x10] sm:$0xff]  ;;  %v1096_v41 = vmov 0.0|0.0   ;;  %vm1097_vm2 = vmmov 0  }
  0x5d   :  { %v113_v2 = vsel %vm112_vm0, %v1242_v0, 0.0  ;;  %v116_v3 = vsel %vm112_vm0, %v1247_v1, 0.0  ;;  %v274_v14 = vld [vmem:[%s1366_s4] sm:$0xff]  ;;  %v275_v15 = vld [vmem:[%s1366_s4 + $0x8] sm:$0xff]  ;;  %v277_v18 = vld [vmem:[%s1366_s4 + $0x18] sm:$0xff]  ;;  %837 = vmatprep.subr.bf16.mxu0 %v1096_v41  ;;  %v1098_v46 = vmov 0.0  }
  0x5e   :  { %114 = vadd.xlane.f32.xlu0 %v113_v2  ;;  %v841_v17 = vpack.c.bf16 %v275_v15, %v274_v14  ;;  %v845_v19 = vpack.c.bf16 %v277_v18, %v276_v16  ;;  %v738_v27 = vld [vmem:[#allocation6] ss:$0 sm:$0xff]  ;;  %v739_v29 = vld [vmem:[#allocation8] ss:$0 sm:$0xff]  ;;  %v108_v36 = vld [vmem:[#allocation2] sm:$0xff]  ;;  %794 = vmatprep.mubr.msk.f32.mxu0 %vm1097_vm2, %v1098_v46  ;;  %v1099_v47 = vmov 1.0  }
  0x5f   :  { %v109_v37 = vld [vmem:[#allocation2 + $0x8] sm:$0xff]  ;;  %v156_v38 = vmul.f32 %v108_v36, %v1242_v0  ;;  %vm1275_vm1 = vmpackc.low %vm112_vm0, %vm112_vm0  ;;  %v382_v43 = vld [vmem:[#allocation9] sm:$0xff]  ;;  %s506_s6 = sld [smem:[#allocation11]]  ;;  %s761_s10 = sld [smem:[#allocation11 + $0x1]]  ;;  %vm702_vm3 = vcmask 122880  }
  0x60   :  { %842 = vmatprep.subr.bf16.mxu1 %v841_v17  ;;  %v157_v39 = vmul.f32 %v109_v37, %v1247_v1  ;;  %v383_v44 = vld [vmem:[#allocation9 + $0x8] sm:$0xff]  ;;  %v384_v48 = vld [vmem:[#allocation9 + $0x10] sm:$0xff]  ;;  %v385_v49 = vld [vmem:[#allocation9 + $0x18] sm:$0xff] }
  0x61   :  { %844 = vmatpush3.bf16.msra.mxu1 %v841_v17  ;;  %v849_v45 = vpack.c.bf16 %v383_v44, %v382_v43  ;;  %v853_v50 = vpack.c.bf16 %v385_v49, %v384_v48  ;;  %v158_v52 = vsel %vm112_vm0, %v156_v38, 0.0  ;;  %v749_v53 = vld [vmem:[%s1367_s5] ss:$0 sm:$0xff] }
  0x62   :  { %117 = vadd.xlane.f32.xlu0 %v116_v3  ;;  %846 = vmatprep.subr.bf16.mxu1 %v845_v19  ;;  %v838_v40 = vpack.c.bf16 %v157_v39, %v156_v38  ;;  %v161_v51 = vsel %vm112_vm0, %v157_v39, 0.0 }
  0x64   :  { %840 = vmatpush3.bf16.xpose.msk.msra.mxu0 %vm1275_vm1, %v838_v40 }
  0x65   :  { %848 = vmatpush3.bf16.msra.mxu1 %v845_v19  ;;  %850 = vmatprep.subr.bf16.mxu0 %v849_v45 }
  0x66   :  { %159 = vadd.xlane.f32.xlu0 %v158_v52  ;;  %v504_v52 = vld [vmem:[%s1370_s8 + $0x10] sm:$0xff] }
  0x6b   :  { %795 = vmatmul.mubr.msk.f32.vlgmr.msra.gmra.mrb[0].mxu0 %vm112_vm0, %v1099_v47 }
  0x6c   :  { %852 = vmatpush3.bf16.msra.mxu0 %v849_v45 }
  0x6d   :  { %854 = vmatprep.subr.bf16.mxu0 %v853_v50 }
  0x70   :  { %856 = vmatpush3.bf16.msra.mxu0 %v853_v50  ;;  %v502_v50 = vld [vmem:[%s1370_s8] sm:$0xff] }
  0x71   :  { %865 = vmatprep.subr.bf16.mxu0 %v1096_v41 }
  0xeb   :  { %v115_v4 = vpop.xlane.xlu0 %114 }
  0xec   :  { %v120_v5 = vmul.f32 0.03125, %v115_v4 }
  0xee   :  { %v122_v6 = vsub.f32 %v1242_v0, %v120_v5 }
  0xef   :  { %v118_v7 = vpop.xlane.xlu0 %117 }
  0xf0   :  { %v121_v8 = vmul.f32 0.03125, %v118_v7  ;;  %v124_v9 = vmul.f32 %v122_v6, %v122_v6 }
  0xf2   :  { %v123_v10 = vsub.f32 %v1247_v1, %v121_v8  ;;  %v126_v11 = vsel %vm112_vm0, %v124_v9, 0.0 }
  0xf3   :  { %127 = vadd.xlane.f32.xlu1 %v126_v11  ;;  %v160_v11 = vpop.xlane.xlu0 %159 }
  0xf4   :  { %v125_v12 = vmul.f32 %v123_v10, %v123_v10 }
  0xf6   :  { %v129_v13 = vsel %vm112_vm0, %v125_v12, 0.0 }
  0xf7   :  { %130 = vadd.xlane.f32.xlu1 %v129_v13  ;;  %v740_v13 = vadd.f32 -0.29514, %v160_v11 }
  0xf9   :  { %v742_v15 = vmul.f32 -1.442695, %v740_v13 }
  0xfb   :  { %162 = vadd.xlane.f32.xlu1 %v161_v51  ;;  %v503_v51 = vld [vmem:[%s1370_s8 + $0x8] sm:$0xff] }
 0x13e   :  { %v1291_v8 = vpop.f32.mrb[0].mxu0 }
 0x13f   :  { %v796_v9 = vpop.f32.mrb[1].mxu0 }
 0x140   :  { %v747_v9 = vadd.f32 -0.29514, %v1291_v8 }
 0x142   :  { %v748_v42 = vmul.f32 -1.442695, %v747_v9 }
 0x180   :  { %v128_v20 = vpop.xlane.xlu1 %127 }
 0x181   :  { %v132_v21 = vmul.f32 0.03125, %v128_v20  ;;  %v265_v20 = vmul.f32 -0.25, %v1247_v1 }
 0x183   :  { %v134_v22 = vadd.f32 1e-05, %v132_v21 }
 0x184   :  { %v131_v23 = vpop.xlane.xlu1 %130 }
 0x185   :  { %885 = vrsqrt.f32 %v134_v22  ;;  %v133_v24 = vmul.f32 0.03125, %v131_v23  ;;  %v264_v22 = vmul.f32 -0.25, %v1242_v0 }
 0x187   :  { %v135_v25 = vadd.f32 1e-05, %v133_v24 }
 0x189   :  { %887 = vrsqrt.f32 %v135_v25 }
 0x18f   :  { %v886_v26 = vpop.eup %885 }
 0x190   :  { %v138_v28 = vmul.f32 %v886_v26, %v122_v6 }
 0x192   :  { %v146_v30 = vmul.f32 %v738_v27, %v138_v28 }
 0x193   :  { %v888_v31 = vpop.eup %887 }
 0x194   :  { %v139_v32 = vmul.f32 %v888_v31, %v123_v10  ;;  %v154_v33 = vadd.f32 %v739_v29, %v146_v30  ;;  %v163_v10 = vpop.xlane.xlu1 %162  ;;  %v754_v30 = vld [vmem:[%s1369_s7] ss:$0 sm:$0xff] }
 0x195   :  { %v741_v12 = vadd.f32 -0.29514, %v163_v10 }
 0x196   :  { %v147_v34 = vmul.f32 %v738_v27, %v139_v32  ;;  %805 = vmatprep.mubr.msk.f32.mxu1 %vm112_vm0, %v154_v33 }
 0x197   :  { %v743_v14 = vmul.f32 -1.442695, %v741_v12 }
 0x198   :  { %v155_v35 = vadd.f32 %v739_v29, %v147_v34 }
 0x19a   :  { %806 = vmatmul.mubr.msk.f32.vlgmr.msra.gmra.mrb[0].mxu1 %vm112_vm0, %v155_v35 }
 0x26d   :  { %v807_v54 = vpop.f32.mrb[0].mxu1 }
 0x26e   :  { %v363_v55 = vadd.f32 %v807_v54, %v749_v53  ;;  %v357_v56 = vpop.f32.mrb[1].mxu1  ;;  %v505_v54 = vld [vmem:[%s1370_s8 + $0x18] sm:$0xff] }
 0x26f   :  { %v358_v57 = vadd.f32 %v749_v53, %v357_v56  ;;  %v857_v53 = vpack.c.bf16 %v503_v51, %v502_v50 }
 0x270   :  { %v753_v58 = vmul.f32 -0.25, %v363_v55 }
 0x271   :  { %v752_v59 = vmul.f32 -0.25, %v358_v57  ;;  %858 = vmatprep.subr.bf16.mxu1 %v857_v53 }
 0x272   :  { %v372_v60 = vmul.f32 1.442695, %v753_v58  ;;  %860 = vmatpush3.bf16.msra.mxu1 %v857_v53 }
 0x273   :  { %v370_v61 = vmul.f32 1.442695, %v752_v59 }
 0x274   :  { %889 = vpow2.f32 %v372_v60 }
 0x275   :  { %891 = vpow2.f32 %v370_v61 }
 0x27e   :  { %v890_v62 = vpop.eup %889 }
 0x27f   :  { %v892_v63 = vpop.eup %891  ;;  %v375_v2 = vadd.f32 1.0, %v890_v62 }
 0x280   :  { %v374_v3 = vadd.f32 1.0, %v892_v63 }
 0x281   :  { %893 = vrcp.f32 %v375_v2 }
 0x282   :  { %895 = vrcp.f32 %v374_v3 }
 0x283   :  { %897 = vpow2.f32 %v743_v14  ;;  %v621_v14 = vstv %s761_s10 }
 0x284   :  { %899 = vpow2.f32 %v742_v15 }
 0x28b   :  { %v894_v4 = vpop.eup %893 }
 0x28c   :  { %v896_v5 = vpop.eup %895  ;;  %v381_v7 = vmul.f32 %v894_v4, %v363_v55  ;;  %v861_v55 = vpack.c.bf16 %v505_v54, %v504_v52 }
 0x28d   :  { %v380_v6 = vmul.f32 %v896_v5, %v358_v57  ;;  %v898_v16 = vpop.eup %897  ;;  %v619_v5 = vld [vmem:[%s1371_s9] sm:$0x1]  ;;  %s1101_s9 = smov [#allocation13]  }
 0x28e   :  { %v900_v17 = vpop.eup %899  ;;  %v173_v18 = vadd.f32 1.0, %v898_v16  ;;  %862 = vmatprep.subr.bf16.mxu1 %v861_v55  ;;  %s722_s15 = sshll.u32 %s1101_s9, 4  ;;  %s723_s15 = int_to_ptr.vmem [resolvable:$true] %s722_s15 }
 0x28f   :  { %816 = vmatprep.mubr.msk.f32.mxu0 %vm112_vm0, %v380_v6  ;;  %v172_v19 = vadd.f32 1.0, %v900_v17  ;;  %864 = vmatpush3.bf16.msra.mxu1 %v861_v55  ;;  %v1100_v6 = vmov 0   ;;  %s1033_s24 = scalar_lea.vmem %s723_s15, 16  ;;  %s1037_s0 = scalar_lea.vmem %s723_s15, 32 }
 0x290   :  { %817 = vmatmul.mubr.msk.f32.vlgmr.msra.gmra.mrb[2].mxu0 %vm112_vm0, %v381_v7  ;;  %901 = vrcp.f32 %v173_v18  ;;  %884 = vset.pattern.permute.xlu1 %v1100_v6  ;;  %v507_v7 = vstv %s506_s6  ;;  %p1034_p9 = scmp.ne.s32.totalorder %s723_s15, %s1033_s24  ;;  %p1038_p10 = scmp.lt.s32.totalorder %s723_s15, %s723_s15 }
 0x291   :  { %834 = vmatprep.mubr.msk.f32.mxu0 %vm1097_vm2, %v1098_v46  ;;  %903 = vrcp.f32 %v172_v19  ;;  %883 = vset.pattern.permute.xlu0 %v1100_v6  ;;  %p1039_p11 = scmp.lt.s32.totalorder %s1037_s0, %s1033_s24 }
 0x293   :  { %p1040_p12 = por %p1039_p11, %p1038_p10 }
 0x295   :  { %p1041_p13 = pnand %p1040_p12, %p1034_p9 }
 0x29a   :  { %v902_v21 = vpop.eup %901 }
 0x29b   :  { %v904_v23 = vpop.eup %903  ;;  %v267_v24 = vmul.f32 %v902_v21, %v265_v20 }
 0x29c   :  { %v266_v25 = vmul.f32 %v904_v23, %v264_v22 }
 0x29d   :  { %v270_v26 = vmul.f32 1.442695, %v267_v24 }
 0x29e   :  { %v268_v27 = vmul.f32 1.442695, %v266_v25 }
 0x29f   :  { %905 = vpow2.f32 %v270_v26 }
 0x2a0   :  { %907 = vpow2.f32 %v268_v27 }
 0x2a9   :  { %v906_v28 = vpop.eup %905 }
 0x2aa   :  { %v908_v29 = vpop.eup %907  ;;  %v273_v31 = vsub.f32 1.0, %v906_v28 }
 0x2ab   :  { %v272_v33 = vsub.f32 1.0, %v908_v29 }
 0x363   :  { %v818_v32 = vpop.f32.mrb[2].mxu0 }
 0x364   :  { %v471_v1 = vadd.f32 %v818_v32, %v754_v30  ;;  %v465_v34 = vpop.f32.mrb[3].mxu0 }
 0x365   :  { %v466_v35 = vadd.f32 %v754_v30, %v465_v34 }
 0x366   :  { %v1298_v0 = vmul.f32 %v471_v1, %v273_v31 }
 0x367   :  { %v1300_v36 = vmul.f32 %v466_v35, %v272_v33 }
 0x368   :  { %v479_v37 = vsel %vm112_vm0, %v1298_v0, 0.0 }
 0x369   :  { %480 = vadd.xlane.f32.xlu1 %v479_v37  ;;  %v476_v38 = vsel %vm112_vm0, %v1300_v36, 0.0 }
 0x36a   :  { %477 = vadd.xlane.f32.xlu0 %v476_v38 }
 0x3f6   :  { %v481_v39 = vpop.xlane.xlu1 %480 }
 0x3f7   :  { %v483_v40 = vmul.f32 0.03125, %v481_v39  ;;  %v478_v41 = vpop.xlane.xlu0 %477 }
 0x3f8   :  { %v482_v43 = vmul.f32 0.03125, %v478_v41 }
 0x3f9   :  { %v485_v44 = vsub.f32 %v1298_v0, %v483_v40 }
 0x3fa   :  { %v484_v45 = vsub.f32 %v1300_v36, %v482_v43 }
 0x3fb   :  { %v487_v46 = vmul.f32 %v485_v44, %v485_v44 }
 0x3fc   :  { %v486_v47 = vmul.f32 %v484_v45, %v484_v45 }
 0x3fd   :  { %v491_v48 = vsel %vm112_vm0, %v487_v46, 0.0 }
 0x3fe   :  { %492 = vadd.xlane.f32.xlu1 %v491_v48  ;;  %v488_v49 = vsel %vm112_vm0, %v486_v47, 0.0 }
 0x3ff   :  { %489 = vadd.xlane.f32.xlu0 %v488_v49 }
 0x48b   :  { %v493_v56 = vpop.xlane.xlu1 %492 }
 0x48c   :  { %v495_v57 = vmul.f32 0.03125, %v493_v56  ;;  %v490_v58 = vpop.xlane.xlu0 %489 }
 0x48d   :  { %v494_v59 = vmul.f32 0.03125, %v490_v58 }
 0x48e   :  { %v497_v60 = vadd.f32 1e-05, %v495_v57 }
 0x48f   :  { %v496_v61 = vadd.f32 1e-05, %v494_v59 }
 0x490   :  { %909 = vrsqrt.f32 %v497_v60 }
 0x491   :  { %911 = vrsqrt.f32 %v496_v61 }
 0x49a   :  { %v910_v62 = vpop.eup %909 }
 0x49b   :  { %v912_v63 = vpop.eup %911  ;;  %v501_v2 = vmul.f32 %v910_v62, %v485_v44 }
 0x49c   :  { %v500_v3 = vmul.f32 %v912_v63, %v484_v45 }
 0x49e   :  { %827 = vmatprep.mubr.msk.f32.mxu1 %vm112_vm0, %v500_v3  ;;  %v866_v4 = vpack.c.bf16 %v501_v2, %v500_v3 }
 0x49f   :  { %828 = vmatmul.mubr.msk.f32.vlgmr.msra.gmra.mrb[2].mxu1 %vm112_vm0, %v501_v2 }
 0x4a0   :  { %868 = vmatpush3.bf16.xpose.msk.msra.mxu0 %vm1275_vm1, %v866_v4 }
 0x4a7   :  { %835 = vmatmul.mubr.msk.f32.vlgmr.msra.gmra.mrb[4].mxu0 %vm112_vm0, %v619_v5 }
 0x572   :  { %v829_v10 = vpop.f32.mrb[2].mxu1 }
 0x573   :  { %v586_v11 = vadd.f32 %v829_v10, %v507_v7  ;;  %v580_v12 = vpop.f32.mrb[3].mxu1 }
 0x574   :  { %v581_v13 = vadd.f32 %v580_v12, %v507_v7 }
 0x575   :  { %913 = vtanh.f32 %v586_v11 }
 0x576   :  { %915 = vtanh.f32 %v581_v13 }
 0x577   :  { %917 = vpow2.f32 %v748_v42 }
 0x57a   :  { %v691_v15 = vpop.f32.mrb[4].mxu0 }
 0x57b   :  { %v692_v16 = vadd.f32 %v691_v15, %v621_v14  ;;  %v836_v17 = vpop.f32.mrb[5].mxu0 }
 0x57d   :  { %v765_v18 = vmul.f32 -1.442695, %v692_v16 }
 0x57f   :  { %v914_v19 = vpop.eup %913  ;;  %919 = vpow2.f32 %v765_v18 }
 0x580   :  { %v916_v20 = vpop.eup %915  ;;  %v760_v21 = vmul.f32 -1.442695, %v914_v19 }
 0x581   :  { %v759_v22 = vmul.f32 -1.442695, %v916_v20  ;;  %v918_v8 = vpop.eup %917 }
 0x582   :  { %921 = vpow2.f32 %v760_v21  ;;  %v261_v23 = vadd.f32 1.0, %v918_v8 }
 0x583   :  { %923 = vpow2.f32 %v759_v22 }
 0x584   :  { %925 = vrcp.f32 %v261_v23 }
 0x589   :  { %v920_v24 = vpop.eup %919 }
 0x58a   :  { %v698_v25 = vadd.f32 1.0, %v920_v24 }
 0x58c   :  { %v922_v26 = vpop.eup %921  ;;  %927 = vrcp.f32 %v698_v25 }
 0x58d   :  { %v924_v27 = vpop.eup %923  ;;  %v598_v28 = vadd.f32 1.0, %v922_v26 }
 0x58e   :  { %v597_v29 = vadd.f32 1.0, %v924_v27  ;;  %v926_v30 = vpop.eup %925 }
 0x58f   :  { %929 = vrcp.f32 %v598_v28 }
 0x590   :  { %931 = vrcp.f32 %v597_v29 }
 0x596   :  { %v928_v31 = vpop.eup %927 }
 0x597   :  { %v701_v32 = vmul.f32 %v928_v31, %v926_v30 }
 0x599   :  { %v930_v33 = vpop.eup %929  ;;  %703 = vst.msk [vmem:[#allocation13] sm:$0x1] %vm702_vm3, %v701_v32 }
 0x59a   :  { %v932_v1 = vpop.eup %931  ;;  %v604_v34 = vmin.f32 %v930_v33, 0.29514 }
 0x59b   :  { %v603_v35 = vmin.f32 %v932_v1, 0.29514 }
 0x59c   :  { %612 = vperm.xlu1 %884, %v604_v34  }
 0x59d   :  { %607 = vperm.xlu0 %883, %v603_v35  }
 0x59e   :  { %1044 = shalt.err (!%p1041_p13)
}
 0x59f   :  { %s1045_s27 = scalar_lea.hbm %s1374_s12, 16 }
 0x5a0   :  { %p1046_p0 = scmp.ne.s32.totalorder %s1374_s12, %s1045_s27  ;;  %p1049_p1 = scmp.lt.u32.totalorder %s1045_s27, %s1374_s12 }
 0x5a2   :  { %p1051_p2 = pnand %p1049_p1, %p1046_p0 }
 0x5a4   :  { %1054 = shalt.err (!%p1051_p2)
}
 0x5a5   :  { %725 = dma.vmem_to_hbm [thread:$0]  %s723_s15, 16, %s1374_s12, [#allocation14]  }
 0x5a6   :  { %s1102_s5 = smov [#allocation12]  }
 0x5a7   :  { %s709_s17 = sshll.u32 %s1102_s5, 4  ;;  %s710_s17 = int_to_ptr.vmem [resolvable:$true] %s709_s17 }
 0x5a8   :  { %s1055_s7 = scalar_lea.vmem %s710_s17, 256  ;;  %p1060_p4 = scmp.lt.s32.totalorder %s710_s17, %s710_s17 }
 0x5a9   :  { %p1056_p3 = scmp.ne.s32.totalorder %s710_s17, %s1055_s7  ;;  %p1061_p5 = scmp.lt.s32.totalorder %s1055_s7, %s1055_s7 }
 0x5ab   :  { %p1062_p6 = por %p1061_p5, %p1060_p4 }
 0x5ad   :  { %p1063_p7 = pnand %p1062_p6, %p1056_p3 }
 0x61b   :  { %v613_v37 = vpop.permute.xlu1 %612 }
 0x61c   :  { %v616_v38 = vmul.f32 %v613_v37, %v1298_v0  ;;  %v608_v39 = vpop.permute.xlu0 %607 }
 0x61d   :  { %v615_v40 = vmul.f32 %v608_v39, %v1300_v36 }
 0x61e   :  { %618 = vst.msk [vmem:[#allocation12 + $0x8] sm:$0xff] %vm112_vm0, %v616_v38 }
 0x61f   :  { %617 = vst.msk [vmem:[#allocation12] sm:$0xff] %vm112_vm0, %v615_v40 }
 0x620   :  { %1066 = shalt.err (!%p1063_p7)
}
 0x621   :  { %s1067_s3 = scalar_lea.hbm %s1373_s11, 256 }
 0x622   :  { %p1068_p8 = scmp.ne.s32.totalorder %s1373_s11, %s1067_s3  ;;  %p1071_p9 = scmp.lt.u32.totalorder %s1067_s3, %s1373_s11 }
 0x624   :  { %p1073_p10 = pnand %p1071_p9, %p1068_p8 }
 0x626   :  { %1076 = shalt.err (!%p1073_p10)
}
 0x627   :  { %715 = dma.vmem_to_hbm [thread:$0]  %s710_s17, 256, %s1373_s11, [#allocation4], %s1091_s2, %s1091_s2, %s1092_s22  }
 0x628   :  { %1085 = dma.done.wait [#allocation4], 256  }
 0x629   :  { %1086 = vsyncadd [#allocation4], 4294967040 }
 0x62a   :  { %1087 = dma.done.wait [#allocation14], 16  }
 0x62b   :  { %1088 = vsyncadd [#allocation14], 4294967280 }
 0x62c   :  { %732 = vsyncpa [#allocation3], 1 }
 0x62d   :  { %733 = vsyncpa [#allocation7], 1 }
 0x62e   :  { %734 = vsyncpa [#allocation10], 1 }
 0x62f   :  { %735 = vsyncpa [#allocation4], 1 }
 0x630   :  { %736 = vsyncpa [#allocation14], 1 }
 0x631   :  { %737 = vsyncpa [#allocation5], 1 }

</bundles_post_ra>
